<compile_context>
chip_gen: v7x
topology: tpu7x:2x2x1
jax: 0.10.0
libtpu: 0.0.40
codegen_flags: <defaults>
</compile_context>

<pallas_src>
import numpy as np

import jax
import jax.numpy as jnp
from jax.experimental import pallas as pl
from jax.experimental.pallas import tpu as pltpu


# ----------------------------- config (small) -------------------------------
HIDDEN = 64
NUM_HEADS = 4
NUM_KV_HEADS = 2
HEAD_DIM = HIDDEN // NUM_HEADS          # 16
ROPE_PCT = 0.5
ROT_DIM = int(HEAD_DIM * ROPE_PCT)      # 8 (partial rotary)
HALF = ROT_DIM // 2                     # 4
ROPE_THETA = 10000.0
SEQ = 8
Q_SIZE = NUM_HEADS * HEAD_DIM           # 64
KV_SIZE = NUM_KV_HEADS * HEAD_DIM       # 32
QKV_SIZE = Q_SIZE + 2 * KV_SIZE         # 128 (lane-dense projection output)
SCALING = HEAD_DIM ** -0.5              # 0.25, exact power of two
GROUP = NUM_HEADS // NUM_KV_HEADS       # GQA group size


# ------------------------------ fused kernel --------------------------------
def _fused_attn_kernel(x_ref, w_ref, b_ref, r_ref, c_ref, s_ref, wo_ref, o_ref):
    t = x_ref.shape[0]

    # --- fused QKV projection: bf16 inputs, f32 accumulate, 128-lane output ---
    x = x_ref[...].astype(jnp.bfloat16)
    qkv = jnp.dot(x, w_ref[...], preferred_element_type=jnp.float32) + b_ref[...]

    # column layout (host-reordered): [ q(g=0) | q(g=1) | k | v ], each KV_SIZE
    q0 = qkv[:, 0:KV_SIZE]                        # heads {0, 2}, per-KV blocks
    q1 = qkv[:, KV_SIZE:2 * KV_SIZE]              # heads {1, 3}
    k = qkv[:, 2 * KV_SIZE:3 * KV_SIZE]
    v = qkv[:, 3 * KV_SIZE:4 * KV_SIZE].astype(jnp.bfloat16)

    # --- partial NeoX rotary on one [3T, KV_SIZE] batch (q0, q1, k share it) ---
    #   rope(x) = x * C + (x @ R) * S
    # R swaps the two rotary halves per head; C/S carry the partial-rotary
    # pass-through and the NeoX signs.  Attention scale is folded into W_q.
    rb = jnp.concatenate([q0, q1, k], axis=0)                    # [3T, KV_SIZE]
    c3 = jnp.concatenate([c_ref[...]] * (GROUP + 1), axis=0)
    s3 = jnp.concatenate([s_ref[...]] * (GROUP + 1), axis=0)
    rb = rb * c3 + jnp.dot(rb, r_ref[...],
                           preferred_element_type=jnp.float32) * s3
    rb = rb.astype(jnp.bfloat16)                  # bf16 operands for score dots

    # causal mask for the GROUP-stacked query rows: [GROUP*T, T]
    row = jax.lax.broadcasted_iota(jnp.int32, (t, t), 0)
    col = jax.lax.broadcasted_iota(jnp.int32, (t, t), 1)
    causal = jnp.concatenate([col <= row] * GROUP, axis=0)

    dn = (((1,), (1,)), ((), ()))                 # contract last dims (q @ k.T)
    acc = jnp.zeros((t, HIDDEN), jnp.float32)     # o_proj accumulator

    for kvh in range(NUM_KV_HEADS):               # static unrolled KV-head loop
        lo, hi = kvh * HEAD_DIM, (kvh + 1) * HEAD_DIM
        q_pair = rb[:GROUP * t, lo:hi]            # [GROUP*T, D] both q heads
        k_h = rb[GROUP * t:, lo:hi]               # [T, D]
        v_h = v[:, lo:hi]                         # [T, D] bf16

        s = jax.lax.dot_general(q_pair, k_h, dn,
                                preferred_element_type=jnp.float32)  # [G*T, T]
        s = jnp.where(causal, s, jnp.float32(-1e30))

        m = jnp.max(s, axis=-1, keepdims=True)
        p = jnp.exp(s - m)                                           # f32
        p = p * pl.reciprocal(jnp.sum(p, axis=-1, keepdims=True), approx=True)

        pv = jnp.dot(p.astype(jnp.bfloat16), v_h,
                     preferred_element_type=jnp.float32)             # [G*T, D]

        # o_proj accumulation per head: every MXU result is N=HIDDEN wide,
        # no concatenate of 16-lane pieces.
        for g in range(GROUP):
            h = kvh * GROUP + g
            head_out = pv[g * t:(g + 1) * t, :].astype(jnp.bfloat16)
            acc = acc + jnp.dot(
                head_out, wo_ref[h * HEAD_DIM:(h + 1) * HEAD_DIM, :],
                preferred_element_type=jnp.float32)

    # single HBM store (64-lane at this toy HIDDEN; lane-dense at real sizes)
    o_ref[...] = acc.astype(o_ref.dtype)


# --------------------------- host-side parameter prep ------------------------
def _regroup_q_cols(a):
    """Reorder q columns from head-major (kvh, g, d) to group-major (g, kvh, d)
    so the GROUP query heads sharing a KV head land in matching KV-width blocks."""
    lead = a.shape[:-1]
    a = a.reshape(*lead, NUM_KV_HEADS, GROUP, HEAD_DIM)
    a = jnp.swapaxes(a, -3, -2)
    return a.reshape(*lead, Q_SIZE)


def _rope_swap():
    """Block-diagonal 'swap rotary halves' matrix at KV width (shared by q & k)."""
    r = np.zeros((HEAD_DIM, HEAD_DIM), np.float32)
    for i in range(HALF):
        r[i + HALF, i] = 1.0      # (x @ R)[:, i]        = x[:, i + HALF]
        r[i, i + HALF] = 1.0      # (x @ R)[:, i + HALF] = x[:, i]
    return jnp.asarray(np.kron(np.eye(NUM_KV_HEADS, dtype=np.float32), r))


def _rope_tables(positions):
    """cos / signed-sin tables at KV width only (shared by q and k)."""
    t = positions.shape[0]
    inv_freq = 1.0 / (ROPE_THETA ** (jnp.arange(0, ROT_DIM, 2, dtype=jnp.float32)
                                     / ROT_DIM))
    freqs = positions.astype(jnp.float32)[:, None] * inv_freq[None, :]  # [T, HALF]
    cos, sin = jnp.cos(freqs), jnp.sin(freqs)

    pass_w = HEAD_DIM - ROT_DIM
    ones_p = jnp.ones((t, pass_w), jnp.float32)
    zeros_p = jnp.zeros((t, pass_w), jnp.float32)
    c_head = jnp.concatenate([cos, cos, ones_p], axis=1)       # [T, HEAD_DIM]
    s_head = jnp.concatenate([-sin, sin, zeros_p], axis=1)     # [T, HEAD_DIM]
    return (jnp.tile(c_head, (1, NUM_KV_HEADS)),               # [T, KV_SIZE]
            jnp.tile(s_head, (1, NUM_KV_HEADS)))


# ------------------------------- full forward --------------------------------
def stablelm_attention_forward(positions, hidden_states, w_qkv, b_qkv, w_o):
    T = hidden_states.shape[0]

    # One-time weight layout prep (done at weight-load time in a real server).
    # Attention scale folded into W_q / b_q (0.25 -> exact), GQA group reorder,
    # fused column layout [q(g=0) | q(g=1) | k | v], bf16 weights.
    w_q = _regroup_q_cols(w_qkv[:, :Q_SIZE] * SCALING)
    w_k = w_qkv[:, Q_SIZE:Q_SIZE + KV_SIZE]
    w_v = w_qkv[:, Q_SIZE + KV_SIZE:]
    b_q = _regroup_q_cols(b_qkv[:, :Q_SIZE] * SCALING)
    b_k = b_qkv[:, Q_SIZE:Q_SIZE + KV_SIZE]
    b_v = b_qkv[:, Q_SIZE + KV_SIZE:]
    w_fused = jnp.concatenate([w_q, w_k, w_v], axis=1).astype(jnp.bfloat16)
    b_fused = jnp.concatenate([b_q, b_k, b_v], axis=1).astype(jnp.float32)
    w_o_bf = w_o.astype(jnp.bfloat16)

    # Tiny position-dependent rotary constants (cacheable per position block).
    c_tab, s_tab = _rope_tables(positions)
    r_swap = _rope_swap()

    vmem = pl.BlockSpec(memory_space=pltpu.VMEM)
    return pl.pallas_call(
        _fused_attn_kernel,
        out_shape=jax.ShapeDtypeStruct((T, HIDDEN), hidden_states.dtype),
        in_specs=[vmem] * 7,
        out_specs=vmem,
    )(hidden_states, w_fused, b_fused, r_swap, c_tab, s_tab, w_o_bf)


# ------------------------------ pure-JAX reference ----------------------------
def reference_forward(positions, hidden_states, w_qkv, b_qkv, w_o):
    T = hidden_states.shape[0]
    qkv = hidden_states @ w_qkv + b_qkv[0]
    q = qkv[:, :Q_SIZE].reshape(T, NUM_HEADS, HEAD_DIM)
    k = qkv[:, Q_SIZE:Q_SIZE + KV_SIZE].reshape(T, NUM_KV_HEADS, HEAD_DIM)
    v = qkv[:, Q_SIZE + KV_SIZE:].reshape(T, NUM_KV_HEADS, HEAD_DIM)

    inv_freq = 1.0 / (ROPE_THETA ** (jnp.arange(0, ROT_DIM, 2, dtype=jnp.float32)
                                     / ROT_DIM))
    freqs = positions.astype(jnp.float32)[:, None] * inv_freq[None, :]
    cos, sin = jnp.cos(freqs), jnp.sin(freqs)

    def rope(x):  # x: [T, nH, D]
        xr, xp = x[..., :ROT_DIM], x[..., ROT_DIM:]
        x1, x2 = xr[..., :HALF], xr[..., HALF:]
        c, s = cos[:, None, :], sin[:, None, :]
        return jnp.concatenate([x1 * c - x2 * s, x2 * c + x1 * s, xp], axis=-1)

    q, k = rope(q), rope(k)
    k = jnp.repeat(k, GROUP, axis=1)
    v = jnp.repeat(v, GROUP, axis=1)

    s = jnp.einsum("qhd,khd->hqk", q, k) * SCALING
    mask = jnp.tril(jnp.ones((T, T), dtype=bool))
    s = jnp.where(mask[None], s, -1e30)
    p = jax.nn.softmax(s, axis=-1)
    o = jnp.einsum("hqk,khd->qhd", p, v).reshape(T, Q_SIZE)
    return o @ w_o


# ----------------------------------- main -------------------------------------
if __name__ == "__main__":
    key = jax.random.PRNGKey(0)
    k1, k2, k3, k4 = jax.random.split(key, 4)

    hidden_states = jax.random.normal(k1, (SEQ, HIDDEN), dtype=jnp.float32)
    positions = jnp.arange(SEQ, dtype=jnp.int32)

    # deterministic synthetic parameters
    w_qkv = jax.random.normal(k2, (HIDDEN, QKV_SIZE), dtype=jnp.float32) * 0.05
    b_qkv = jax.random.normal(k3, (1, QKV_SIZE), dtype=jnp.float32) * 0.05
    w_o = jax.random.normal(k4, (Q_SIZE, HIDDEN), dtype=jnp.float32) * 0.05

    fwd = jax.jit(stablelm_attention_forward)
    out = fwd(positions, hidden_states, w_qkv, b_qkv, w_o)
    out = jax.block_until_ready(out)

    ref = reference_forward(positions, hidden_states, w_qkv, b_qkv, w_o)
    assert out.shape == (SEQ, HIDDEN)
    # bf16 MXU inputs with f32 accumulation vs a full-f32 reference:
    # tolerance loosened accordingly (observed error ~1e-3..1e-2, bugs are >1e-1).
    max_err = float(jnp.max(jnp.abs(out - ref)))
    assert jnp.allclose(out, ref, atol=3e-2, rtol=3e-2), max_err

    print("KERNEL_OK")
</pallas_src>

<mosaic_0001>
module attributes {stable_mosaic.version = 11 : i64} {
  func.func @_fused_attn_kernel(%arg0: memref<8x64xf32, #tpu.memory_space<vmem>>, %arg1: memref<64x128xbf16, #tpu.memory_space<vmem>>, %arg2: memref<1x128xf32, #tpu.memory_space<vmem>>, %arg3: memref<32x32xf32, #tpu.memory_space<vmem>>, %arg4: memref<8x32xf32, #tpu.memory_space<vmem>>, %arg5: memref<8x32xf32, #tpu.memory_space<vmem>>, %arg6: memref<64x64xbf16, #tpu.memory_space<vmem>>, %arg7: memref<8x64xf32, #tpu.memory_space<vmem>>) attributes {dimension_semantics = [], scalar_prefetch = 0 : i64, scratch_operands = 0 : i64, tpu.core_type = #tpu.core_type<tc>} {
    %c0 = arith.constant 0 : index
    %c0_0 = arith.constant 0 : index
    %0 = vector.load %arg0[%c0, %c0_0] : memref<8x64xf32, #tpu.memory_space<vmem>>, vector<8x64xf32>
    %1 = arith.truncf %0 : vector<8x64xf32> to vector<8x64xbf16>
    %c0_1 = arith.constant 0 : index
    %c0_2 = arith.constant 0 : index
    %2 = vector.load %arg1[%c0_1, %c0_2] : memref<64x128xbf16, #tpu.memory_space<vmem>>, vector<64x128xbf16>
    %cst = arith.constant dense<0.000000e+00> : vector<8x128xf32>
    %3 = tpu.matmul %1, %2, %cst {dimension_numbers = #tpu.dot_dimension_numbers<[1], [0], [0], [1], [0, 0, 1, 1], [], []>} : vector<8x64xbf16>, vector<64x128xbf16>, vector<8x128xf32> -> vector<8x128xf32>
    %c0_3 = arith.constant 0 : index
    %c0_4 = arith.constant 0 : index
    %4 = vector.load %arg2[%c0_3, %c0_4] : memref<1x128xf32, #tpu.memory_space<vmem>>, vector<1x128xf32>
    %5 = vector.broadcast %4 : vector<1x128xf32> to vector<8x128xf32>
    %6 = arith.addf %3, %5 : vector<8x128xf32>
    %7 = vector.extract_strided_slice %6 {offsets = [0, 0], sizes = [8, 32], strides = [1, 1]} : vector<8x128xf32> to vector<8x32xf32>
    %8 = vector.extract_strided_slice %6 {offsets = [0, 32], sizes = [8, 32], strides = [1, 1]} : vector<8x128xf32> to vector<8x32xf32>
    %9 = vector.extract_strided_slice %6 {offsets = [0, 64], sizes = [8, 32], strides = [1, 1]} : vector<8x128xf32> to vector<8x32xf32>
    %10 = vector.extract_strided_slice %6 {offsets = [0, 96], sizes = [8, 32], strides = [1, 1]} : vector<8x128xf32> to vector<8x32xf32>
    %11 = arith.truncf %10 : vector<8x32xf32> to vector<8x32xbf16>
    %12 = tpu.concatenate %7, %8, %9 in 0 : vector<8x32xf32>, vector<8x32xf32>, vector<8x32xf32> -> vector<24x32xf32>
    %c0_5 = arith.constant 0 : index
    %c0_6 = arith.constant 0 : index
    %13 = vector.load %arg4[%c0_5, %c0_6] : memref<8x32xf32, #tpu.memory_space<vmem>>, vector<8x32xf32>
    %14 = tpu.concatenate %13, %13, %13 in 0 : vector<8x32xf32>, vector<8x32xf32>, vector<8x32xf32> -> vector<24x32xf32>
    %c0_7 = arith.constant 0 : index
    %c0_8 = arith.constant 0 : index
    %15 = vector.load %arg5[%c0_7, %c0_8] : memref<8x32xf32, #tpu.memory_space<vmem>>, vector<8x32xf32>
    %16 = tpu.concatenate %15, %15, %15 in 0 : vector<8x32xf32>, vector<8x32xf32>, vector<8x32xf32> -> vector<24x32xf32>
    %17 = arith.mulf %12, %14 : vector<24x32xf32>
    %c0_9 = arith.constant 0 : index
    %c0_10 = arith.constant 0 : index
    %18 = vector.load %arg3[%c0_9, %c0_10] : memref<32x32xf32, #tpu.memory_space<vmem>>, vector<32x32xf32>
    %cst_11 = arith.constant dense<0.000000e+00> : vector<24x32xf32>
    %19 = tpu.matmul %12, %18, %cst_11 {dimension_numbers = #tpu.dot_dimension_numbers<[1], [0], [0], [1], [0, 0, 1, 1], [], []>} : vector<24x32xf32>, vector<32x32xf32>, vector<24x32xf32> -> vector<24x32xf32>
    %20 = arith.mulf %19, %16 : vector<24x32xf32>
    %21 = arith.addf %17, %20 : vector<24x32xf32>
    %22 = arith.truncf %21 : vector<24x32xf32> to vector<24x32xbf16>
    %23 = tpu.iota {dimensions = array<i32: 0>} : vector<8x8xi32>
    %24 = tpu.iota {dimensions = array<i32: 1>} : vector<8x8xi32>
    %25 = arith.cmpi sle, %24, %23 : vector<8x8xi32>
    %26 = tpu.concatenate %25, %25 in 0 : vector<8x8xi1>, vector<8x8xi1> -> vector<16x8xi1>
    %cst_12 = arith.constant 0.000000e+00 : f32
    %27 = vector.broadcast %cst_12 : f32 to vector<8x64xf32>
    %28 = vector.extract_strided_slice %22 {offsets = [0, 0], sizes = [16, 16], strides = [1, 1]} : vector<24x32xbf16> to vector<16x16xbf16>
    %29 = vector.extract_strided_slice %22 {offsets = [16, 0], sizes = [8, 16], strides = [1, 1]} : vector<24x32xbf16> to vector<8x16xbf16>
    %30 = vector.extract_strided_slice %11 {offsets = [0, 0], sizes = [8, 16], strides = [1, 1]} : vector<8x32xbf16> to vector<8x16xbf16>
    %cst_13 = arith.constant dense<0.000000e+00> : vector<16x8xf32>
    %31 = tpu.matmul %28, %29, %cst_13 {dimension_numbers = #tpu.dot_dimension_numbers<[1], [1], [0], [0], [0, 0, 1, 0], [], []>} : vector<16x16xbf16>, vector<8x16xbf16>, vector<16x8xf32> -> vector<16x8xf32>
    %cst_14 = arith.constant -1.000000e+30 : f32
    %32 = vector.broadcast %cst_14 : f32 to vector<16x8xf32>
    %33 = arith.select %26, %31, %32 : vector<16x8xi1>, vector<16x8xf32>
    %cst_15 = arith.constant dense<0xFF800000> : vector<16xf32>
    %34 = vector.multi_reduction <maximumf>, %33, %cst_15 [1] : vector<16x8xf32> to vector<16xf32>
    %35 = vector.shape_cast %34 : vector<16xf32> to vector<16x1xf32>
    %36 = vector.broadcast %35 : vector<16x1xf32> to vector<16x8xf32>
    %37 = arith.subf %33, %36 : vector<16x8xf32>
    %38 = math.exp %37 : vector<16x8xf32>
    %cst_16 = arith.constant dense<0.000000e+00> : vector<16xf32>
    %39 = vector.multi_reduction <add>, %38, %cst_16 [1] : vector<16x8xf32> to vector<16xf32>
    %40 = vector.shape_cast %39 : vector<16xf32> to vector<16x1xf32>
    %41 = tpu.reciprocal %40 {approx = true} : vector<16x1xf32> -> vector<16x1xf32>
    %42 = vector.broadcast %41 : vector<16x1xf32> to vector<16x8xf32>
    %43 = arith.mulf %38, %42 : vector<16x8xf32>
    %44 = arith.truncf %43 : vector<16x8xf32> to vector<16x8xbf16>
    %cst_17 = arith.constant dense<0.000000e+00> : vector<16x16xf32>
    %45 = tpu.matmul %44, %30, %cst_17 {dimension_numbers = #tpu.dot_dimension_numbers<[1], [0], [0], [1], [0, 0, 1, 1], [], []>} : vector<16x8xbf16>, vector<8x16xbf16>, vector<16x16xf32> -> vector<16x16xf32>
    %46 = vector.extract_strided_slice %45 {offsets = [0, 0], sizes = [8, 16], strides = [1, 1]} : vector<16x16xf32> to vector<8x16xf32>
    %47 = arith.truncf %46 : vector<8x16xf32> to vector<8x16xbf16>
    %c0_18 = arith.constant 0 : index
    %c0_19 = arith.constant 0 : index
    %48 = vector.load %arg6[%c0_18, %c0_19] : memref<64x64xbf16, #tpu.memory_space<vmem>>, vector<16x64xbf16>
    %cst_20 = arith.constant dense<0.000000e+00> : vector<8x64xf32>
    %49 = tpu.matmul %47, %48, %cst_20 {dimension_numbers = #tpu.dot_dimension_numbers<[1], [0], [0], [1], [0, 0, 1, 1], [], []>} : vector<8x16xbf16>, vector<16x64xbf16>, vector<8x64xf32> -> vector<8x64xf32>
    %50 = arith.addf %27, %49 : vector<8x64xf32>
    %51 = vector.extract_strided_slice %45 {offsets = [8, 0], sizes = [8, 16], strides = [1, 1]} : vector<16x16xf32> to vector<8x16xf32>
    %52 = arith.truncf %51 : vector<8x16xf32> to vector<8x16xbf16>
    %c16 = arith.constant 16 : index
    %c0_21 = arith.constant 0 : index
    %53 = vector.load %arg6[%c16, %c0_21] : memref<64x64xbf16, #tpu.memory_space<vmem>>, vector<16x64xbf16>
    %cst_22 = arith.constant dense<0.000000e+00> : vector<8x64xf32>
    %54 = tpu.matmul %52, %53, %cst_22 {dimension_numbers = #tpu.dot_dimension_numbers<[1], [0], [0], [1], [0, 0, 1, 1], [], []>} : vector<8x16xbf16>, vector<16x64xbf16>, vector<8x64xf32> -> vector<8x64xf32>
    %55 = arith.addf %50, %54 : vector<8x64xf32>
    %56 = vector.extract_strided_slice %22 {offsets = [0, 16], sizes = [16, 16], strides = [1, 1]} : vector<24x32xbf16> to vector<16x16xbf16>
    %57 = vector.extract_strided_slice %22 {offsets = [16, 16], sizes = [8, 16], strides = [1, 1]} : vector<24x32xbf16> to vector<8x16xbf16>
    %58 = vector.extract_strided_slice %11 {offsets = [0, 16], sizes = [8, 16], strides = [1, 1]} : vector<8x32xbf16> to vector<8x16xbf16>
    %cst_23 = arith.constant dense<0.000000e+00> : vector<16x8xf32>
    %59 = tpu.matmul %56, %57, %cst_23 {dimension_numbers = #tpu.dot_dimension_numbers<[1], [1], [0], [0], [0, 0, 1, 0], [], []>} : vector<16x16xbf16>, vector<8x16xbf16>, vector<16x8xf32> -> vector<16x8xf32>
    %cst_24 = arith.constant -1.000000e+30 : f32
    %60 = vector.broadcast %cst_24 : f32 to vector<16x8xf32>
    %61 = arith.select %26, %59, %60 : vector<16x8xi1>, vector<16x8xf32>
    %cst_25 = arith.constant dense<0xFF800000> : vector<16xf32>
    %62 = vector.multi_reduction <maximumf>, %61, %cst_25 [1] : vector<16x8xf32> to vector<16xf32>
    %63 = vector.shape_cast %62 : vector<16xf32> to vector<16x1xf32>
    %64 = vector.broadcast %63 : vector<16x1xf32> to vector<16x8xf32>
    %65 = arith.subf %61, %64 : vector<16x8xf32>
    %66 = math.exp %65 : vector<16x8xf32>
    %cst_26 = arith.constant dense<0.000000e+00> : vector<16xf32>
    %67 = vector.multi_reduction <add>, %66, %cst_26 [1] : vector<16x8xf32> to vector<16xf32>
    %68 = vector.shape_cast %67 : vector<16xf32> to vector<16x1xf32>
    %69 = tpu.reciprocal %68 {approx = true} : vector<16x1xf32> -> vector<16x1xf32>
    %70 = vector.broadcast %69 : vector<16x1xf32> to vector<16x8xf32>
    %71 = arith.mulf %66, %70 : vector<16x8xf32>
    %72 = arith.truncf %71 : vector<16x8xf32> to vector<16x8xbf16>
    %cst_27 = arith.constant dense<0.000000e+00> : vector<16x16xf32>
    %73 = tpu.matmul %72, %58, %cst_27 {dimension_numbers = #tpu.dot_dimension_numbers<[1], [0], [0], [1], [0, 0, 1, 1], [], []>} : vector<16x8xbf16>, vector<8x16xbf16>, vector<16x16xf32> -> vector<16x16xf32>
    %74 = vector.extract_strided_slice %73 {offsets = [0, 0], sizes = [8, 16], strides = [1, 1]} : vector<16x16xf32> to vector<8x16xf32>
    %75 = arith.truncf %74 : vector<8x16xf32> to vector<8x16xbf16>
    %c32 = arith.constant 32 : index
    %c0_28 = arith.constant 0 : index
    %76 = vector.load %arg6[%c32, %c0_28] : memref<64x64xbf16, #tpu.memory_space<vmem>>, vector<16x64xbf16>
    %cst_29 = arith.constant dense<0.000000e+00> : vector<8x64xf32>
    %77 = tpu.matmul %75, %76, %cst_29 {dimension_numbers = #tpu.dot_dimension_numbers<[1], [0], [0], [1], [0, 0, 1, 1], [], []>} : vector<8x16xbf16>, vector<16x64xbf16>, vector<8x64xf32> -> vector<8x64xf32>
    %78 = arith.addf %55, %77 : vector<8x64xf32>
    %79 = vector.extract_strided_slice %73 {offsets = [8, 0], sizes = [8, 16], strides = [1, 1]} : vector<16x16xf32> to vector<8x16xf32>
    %80 = arith.truncf %79 : vector<8x16xf32> to vector<8x16xbf16>
    %c48 = arith.constant 48 : index
    %c0_30 = arith.constant 0 : index
    %81 = vector.load %arg6[%c48, %c0_30] : memref<64x64xbf16, #tpu.memory_space<vmem>>, vector<16x64xbf16>
    %cst_31 = arith.constant dense<0.000000e+00> : vector<8x64xf32>
    %82 = tpu.matmul %80, %81, %cst_31 {dimension_numbers = #tpu.dot_dimension_numbers<[1], [0], [0], [1], [0, 0, 1, 1], [], []>} : vector<8x16xbf16>, vector<16x64xbf16>, vector<8x64xf32> -> vector<8x64xf32>
    %83 = arith.addf %78, %82 : vector<8x64xf32>
    %c0_32 = arith.constant 0 : index
    %c0_33 = arith.constant 0 : index
    %84 = vector.load %arg7[%c0_32, %c0_33] : memref<8x64xf32, #tpu.memory_space<vmem>>, vector<8x64xf32>
    tpu.vector_store %arg7[%c0_32, %c0_33], %83 {strides = array<i32>} : memref<8x64xf32, #tpu.memory_space<vmem>>, vector<8x64xf32>,
    return
  }
}

</mosaic_0001>

<bundles_post_ra>
// kernel: tile.14
= control target key start
LH: loop header
LB: loop body
LE: loop exit
PB: predicated region body
PF: predicated region fallthrough
CT: control target
= control target key end

     0   :  { %vm42_vm0 = vcmask 1047556   ;;  %vm44_vm1 = vcmask 130048   ;;  %vm54_vm2 = vcmask 261248   ;;  %s111_s0 = inlined_call_operand.vmem [shape: f32[8,2,16], index: 0, kind: input, shape index: {}]   ;;  %s112_s1 = inlined_call_operand.vmem [shape: f32[8,32], index: 1, kind: output, shape index: {}]  }
   0x1   :  { %v62_v0 = vld [vmem:[%s111_s0 + $0xe] sm:$0x3]  ;;  %v63_v1 = vld [vmem:[%s111_s0 + $0xc] sm:$0x3]  ;;  %v64_v2 = vld [vmem:[%s111_s0 + $0xa] sm:$0x3] }
   0x2   :  { %8 = vst [vmem:[#allocation0 + $0x38] sm:$0x3] %v62_v0  ;;  %13 = vst [vmem:[#allocation0 + $0x30] sm:$0x3] %v63_v1  ;;  %v65_v3 = vld [vmem:[%s111_s0 + $0x8] sm:$0x3] }
   0x3   :  { %18 = vst [vmem:[#allocation0 + $0x28] sm:$0x3] %v64_v2  ;;  %v66_v4 = vld [vmem:[%s111_s0 + $0x6] sm:$0x3]  ;;  %v67_v5 = vld [vmem:[%s111_s0 + $0x4] sm:$0x3] }
   0x4   :  { %23 = vst [vmem:[#allocation0 + $0x20] sm:$0x3] %v65_v3  ;;  %28 = vst [vmem:[#allocation0 + $0x18] sm:$0x3] %v66_v4  ;;  %v68_v6 = vld [vmem:[%s111_s0 + $0x2] sm:$0x3] }
   0x5   :  { %33 = vst [vmem:[#allocation0 + $0x10] sm:$0x3] %v67_v5  ;;  %v38_v7 = vld [vmem:[%s111_s0] sm:$0x3]  ;;  %37 = vst [vmem:[#allocation0 + $0x8] sm:$0x3] %v68_v6 }
   0x6   :  { %39 = vst [vmem:[#allocation0] sm:$0x3] %v38_v7  ;;  %s70_s0 = smov 16  }
   0xb   :  { %v41_v8 = vld [vmem:[#allocation0] ss:$8 sm:$0xf0]   ;;  %v49_v9 = vld [vmem:[#allocation0 + $0x1] ss:$8 sm:$0xf0]  }
   0xd   :  { %v40_v10 = vld [vmem:[#allocation0] ss:$8 sm:$0xf]   ;;  %v47_v11 = vld [vmem:[#allocation0 + $0x1] ss:$8 sm:$0xf]  }
   0xe   :  { %v43_v12 = vsel %vm42_vm0, %v41_v8, %v40_v10  ;;  %v51_v13 = vsel %vm42_vm0, %v49_v9, %v47_v11 }
   0xf   :  { %52 = vrot.lane.b32.xlu0 %v51_v13, %s70_s0  ;;  %45 = vst.msk [vmem:[%s112_s1] sm:$0xff] %vm44_vm1, %v43_v12  }
  0x81   :  { %v53_v14 = vpop.permute.xlu0 %52  }
  0x82   :  { %55 = vst.msk [vmem:[%s112_s1] sm:$0xff] %vm54_vm2, %v53_v14  }

// kernel: stablelm_attention_forward.1
= control target key start
LH: loop header
LB: loop body
LE: loop exit
PB: predicated region body
PF: predicated region fallthrough
CT: control target
= control target key end

     0   :  { %v912_v1 = vmov 0.0   ;;  %vm913_vm0 = vmmov 0   ;;  %v914_v5 = vmov 0.0|0.0   ;;  %s1101_s0 = inlined_call_operand.vmem [shape: f32[8,64], index: 0, kind: input, shape index: {}]   ;;  %s1102_s1 = inlined_call_operand.vmem [shape: bf16[64,128], index: 1, kind: input, shape index: {}]   ;;  %s1103_s2 = inlined_call_operand.vmem [shape: f32[1,128], index: 2, kind: input, shape index: {}]   ;;  %s1104_s3 = inlined_call_operand.vmem [shape: f32[32,32], index: 3, kind: input, shape index: {}]   ;;  %s1105_s4 = inlined_call_operand.vmem [shape: f32[8,32], index: 4, kind: input, shape index: {}]   ;;  %s1106_s5 = inlined_call_operand.vmem [shape: f32[8,32], index: 5, kind: input, shape index: {}]   ;;  %s1107_s6 = inlined_call_operand.vmem [shape: bf16[64,64], index: 6, kind: input, shape index: {}]   ;;  %s1108_s7 = inlined_call_operand.hbm [shape: f32[8,64], index: 7, kind: output, shape index: {}]  }
   0x1   :  { %v864_v0 = vld [vmem:[%s1102_s1] sm:$0xff]   ;;  %756 = vmatprep.subr.bf16.mxu0 %v912_v1  ;;  %v865_v2 = vld [vmem:[%s1102_s1 + $0x8] sm:$0xff]   ;;  %764 = vmatprep.mubr.msk.bf16.mxu0 %vm913_vm0, %v912_v1  ;;  %v866_v6 = vld [vmem:[%s1102_s1 + $0x10] sm:$0xff]  }
   0x2   :  { %757 = vmatpush3.bf16.msra.mxu0 %v864_v0  ;;  %779 = vmatprep.mubr.msk.f32.mxu1 %vm913_vm0, %v912_v1  ;;  %v126_v3 = vld [vmem:[%s1104_s3] sm:$0xff]  ;;  %v127_v4 = vld [vmem:[%s1104_s3 + $0x8] sm:$0xff] }
   0x3   :  { %758 = vmatprep.subr.bf16.mxu0 %v912_v1  ;;  %839 = vmatprep.subr.bf16.mxu1 %v914_v5  ;;  %v834_v7 = vpack.c.bf16 %v127_v4, %v126_v3 }
   0x5   :  { %841 = vmatpush3.bf16.msra.mxu1 %v834_v7 }
   0x6   :  { %759 = vmatpush3.bf16.msra.mxu0 %v865_v2  ;;  %840 = vmatprep.subr.bf16.mxu1 %v914_v5 }
   0x7   :  { %760 = vmatprep.subr.bf16.mxu0 %v912_v1 }
   0x8   :  { %12 = vsyncpa [#allocation3], 0  ;;  %v867_v8 = vld [vmem:[%s1102_s1 + $0x18] sm:$0xff]   ;;  %v28_v9 = vld [vmem:[%s1101_s0] sm:$0xff]  ;;  %vm69_vm1 = vcmask 523264   ;;  %vm130_vm2 = vcmask 261120   ;;  %v225_v42 = vlaneseq }
   0x9   :  { %v29_v10 = vpack.c.bf16 %v28_v9, %v28_v9  ;;  %v128_v11 = vld [vmem:[%s1104_s3 + $0x10] sm:$0xff]  ;;  %v129_v12 = vld [vmem:[%s1104_s3 + $0x18] sm:$0xff]  ;;  %v707_v14 = vld [vmem:[%s1103_s2] ss:$0 sm:$0xff]  ;;  %s915_s19 = smov 96   ;;  %s916_s3 = smov 64  }
   0xa   :  { %761 = vmatpush3.bf16.msra.mxu0 %v866_v6  ;;  %v837_v13 = vpack.c.bf16 %v129_v12, %v128_v11  ;;  %v121_v22 = vld [vmem:[%s1105_s4] sm:$0xff]  ;;  %vm230_vm3 = vcmask 130048   ;;  %v1021_v43 = vshrl.u32 %v225_v42, 7  ;;  %v1023_v44 = vand.u32 127, %v225_v42  ;;  %s917_s4 = smov 32   ;;  %s919_s27 = smov 16  }
   0xb   :  { %762 = vmatprep.subr.bf16.mxu0 %v912_v1  ;;  %v122_v23 = vld [vmem:[%s1106_s5] sm:$0xff]  ;;  %vm280_vm5 = vcmask 64512   ;;  %vm310_vm6 = vcmask 1043456   ;;  %s918_s5 = smov 112   ;;  %s920_s9 = smov [#allocation2]  }
   0xc   :  { %842 = vmatpush3.bf16.msra.mxu1 %v837_v13  ;;  %vm229_vm4 = vcmp.le.s32.totalorder %v1023_v44, %v1021_v43  ;;  %s699_s10 = sshll.u32 %s920_s9, 4  ;;  %s700_s10 = int_to_ptr.vmem [resolvable:$true] %s699_s10 }
   0xd   :  { %785 = vmatprep.subr.bf16.mxu1 %v912_v1  ;;  %p893_p1 = scmp.lt.s32.totalorder %s700_s10, %s700_s10 }
   0xe   :  { %763 = vmatpush3.bf16.msra.mxu0 %v867_v8 }
   0xf   :  { %833 = vmatprep.subr.bf16.mxu0 %v914_v5 }
  0x11   :  { %765 = vmatmul.mubr.msk.bf16.vlgmr.msra.gmra.mrb[0].mxu0 %vm69_vm1, %v29_v10 }
  0x12   :  { %835 = vmatpush3.bf16.msra.mxu0 %v834_v7  ;;  %776 = vmatprep.mubr.msk.f32.mxu0 %vm913_vm0, %v912_v1 }
  0x13   :  { %836 = vmatprep.subr.bf16.mxu0 %v914_v5 }
  0x16   :  { %838 = vmatpush3.bf16.msra.mxu0 %v837_v13  ;;  %v868_v13 = vld [vmem:[%s1107_s6 + $0x8] sm:$0xff]  }
  0x17   :  { %791 = vmatprep.subr.bf16.mxu0 %v912_v1 }
  0xe4   :  { %v107_v15 = vpop.f32.mrb[0].mxu0 }
  0xe5   :  { %v108_v16 = vadd.f32 %v707_v14, %v107_v15  ;;  %v766_v17 = vpop.f32.mrb[1].mxu0 }
  0xe6   :  { %v110_v18 = vpop.f32.mrb[2].mxu0  ;;  %v869_v17 = vld [vmem:[%s1107_s6] sm:$0xff]  }
  0xe7   :  { %115 = vrot.lane.b32.xlu0 %v108_v16, %s915_s19  ;;  %v767_v19 = vpop.f32.mrb[3].mxu0  ;;  %777 = vmatmul.mubr.msk.f32.vlgmr.msra.gmra.mrb[4].mxu0 %vm130_vm2, %v108_v16  ;;  %v123_v25 = vmul.f32 %v121_v22, %v108_v16  ;;  %v1035_v53 = vpack.c.bf16 %v108_v16, %v108_v16 }
  0xe8   :  { %793 = vmatprep.mubr.msk.bf16.mxu0 %vm913_vm0, %v912_v1 }
  0xeb   :  { %118 = vrot.lane.b32.xlu0 %v108_v16, %s916_s3 }
 0x159   :  { %v116_v20 = vpop.permute.xlu0 %115 }
 0x15a   :  { %780 = vmatmul.mubr.msk.f32.vlgmr.msra.gmra.mrb[0].mxu1 %vm130_vm2, %v116_v20  ;;  %v124_v30 = vmul.f32 %v121_v22, %v116_v20 }
 0x15b   :  { %782 = vmatprep.mubr.msk.f32.mxu1 %vm913_vm0, %v912_v1 }
 0x15d   :  { %v119_v21 = vpop.permute.xlu0 %118 }
 0x15e   :  { %783 = vmatmul.mubr.msk.f32.gmra.mrb[2].mxu1 %vm130_vm2, %v119_v21  ;;  %v125_v35 = vmul.f32 %v121_v22, %v119_v21 }
 0x15f   :  { %787 = vmatprep.mubr.msk.bf16.mxu1 %vm913_vm0, %v912_v1 }
 0x1ba   :  { %v203_v24 = vpop.f32.mrb[4].mxu0 }
 0x1bb   :  { %v217_v26 = vmul.f32 %v203_v24, %v122_v23  ;;  %v778_v27 = vpop.f32.mrb[5].mxu0 }
 0x1bd   :  { %v220_v28 = vadd.f32 %v217_v26, %v123_v25 }
 0x22d   :  { %v208_v29 = vpop.f32.mrb[0].mxu1 }
 0x22e   :  { %v218_v31 = vmul.f32 %v208_v29, %v122_v23  ;;  %v781_v32 = vpop.f32.mrb[1].mxu1 }
 0x230   :  { %v221_v33 = vadd.f32 %v218_v31, %v124_v30 }
 0x231   :  { %v213_v34 = vpop.f32.mrb[2].mxu1 }
 0x232   :  { %v223_v36 = vpack.c.bf16 %v221_v33, %v220_v28  ;;  %v219_v37 = vmul.f32 %v213_v34, %v122_v23  ;;  %v784_v38 = vpop.f32.mrb[3].mxu1 }
 0x234   :  { %v222_v39 = vadd.f32 %v219_v37, %v125_v35 }
 0x236   :  { %v224_v40 = vpack.c.bf16 %v222_v39, %v222_v39  ;;  %v870_v39 = vld [vmem:[%s1107_s6 + $0x10] sm:$0xff]  }
 0x238   :  { %v235_v41 = vsel %vm230_vm3, %v224_v40, 0 }
 0x239   :  { %786 = vmatpush3.bf16.xpose.msra.mxu1 %v235_v41 }
 0x23a   :  { %797 = vmatprep.subr.bf16.mxu1 %v912_v1 }
 0x240   :  { %788 = vmatmul.mubr.msk.bf16.vlgmr.msra.gmra.mrb[4].mxu1 %vm230_vm3, %v223_v36 }
 0x241   :  { %799 = vmatprep.mubr.msk.bf16.mxu1 %vm913_vm0, %v912_v1  ;;  %798 = vmatpush3.bf16.msra.mxu1 %v868_v13 }
 0x242   :  { %803 = vmatprep.subr.bf16.mxu1 %v912_v1 }
 0x313   :  { %v271_v45 = vpop.f32.mrb[4].mxu1 }
 0x314   :  { %v278_v46 = vsel %vm229_vm4, %v271_v45, -1e+30  ;;  %v789_v47 = vpop.f32.mrb[5].mxu1 }
 0x315   :  { %v274_v48 = vpop.f32.mrb[6].mxu1  ;;  %v281_v49 = vsel %vm280_vm5, %v278_v46, -inf }
 0x316   :  { %v279_v50 = vsel %vm229_vm4, %v274_v48, -1e+30  ;;  %282 = vmax.xlane.f32.xlu1 %v281_v49  ;;  %v790_v51 = vpop.f32.mrb[7].mxu1 }
 0x317   :  { %v284_v52 = vsel %vm280_vm5, %v279_v50, -inf }
 0x31a   :  { %285 = vmax.xlane.f32.xlu1 %v284_v52 }
 0x32b   :  { %305 = vrot.lane.b32.xlu1 %v1035_v53, %s917_s4 }
 0x3a3   :  { %v283_v54 = vpop.xlane.xlu1 %282 }
 0x3a4   :  { %v287_v55 = vsub.f32 %v278_v46, %v283_v54 }
 0x3a6   :  { %v289_v56 = vmul.f32 1.442695, %v287_v55 }
 0x3a7   :  { %v286_v57 = vpop.xlane.xlu1 %285 }
 0x3a8   :  { %872 = vpow2.f32 %v289_v56  ;;  %v288_v58 = vsub.f32 %v279_v50, %v286_v57  ;;  %v871_v50 = vld [vmem:[%s1107_s6 + $0x18] sm:$0xff]   ;;  %s888_s6 = scalar_lea.vmem %s700_s10, 128 }
 0x3a9   :  { %p889_p0 = scmp.ne.s32.totalorder %s700_s10, %s888_s6  ;;  %p894_p2 = scmp.lt.s32.totalorder %s888_s6, %s888_s6 }
 0x3aa   :  { %v291_v59 = vmul.f32 1.442695, %v288_v58 }
 0x3ab   :  { %v306_v60 = vpop.permute.xlu1 %305  ;;  %p895_p3 = por %p894_p2, %p893_p1 }
 0x3ac   :  { %874 = vpow2.f32 %v291_v59  ;;  %v312_v61 = vsel %vm310_vm6, %v306_v60, 0 }
 0x3ad   :  { %792 = vmatpush3.bf16.msra.mxu0 %v312_v61  ;;  %p896_p4 = pnand %p895_p3, %p889_p0 }
 0x3ae   :  { %809 = vmatprep.subr.bf16.mxu0 %v912_v1 }
 0x3b2   :  { %v873_v62 = vpop.eup %872 }
 0x3b3   :  { %v293_v63 = vsel %vm280_vm5, %v873_v62, 0.0 }
 0x3b4   :  { %294 = vadd.xlane.f32.xlu0 %v293_v63 }
 0x3b6   :  { %v875_v0 = vpop.eup %874 }
 0x3b7   :  { %v296_v2 = vsel %vm280_vm5, %v875_v0, 0.0 }
 0x3b8   :  { %297 = vadd.xlane.f32.xlu1 %v296_v2 }
 0x3c9   :  { %463 = vrot.lane.b32.xlu1 %v224_v40, %s918_s5 }
 0x3cd   :  { %460 = vrot.lane.b32.xlu1 %v223_v36, %s918_s5 }
 0x441   :  { %v295_v3 = vpop.xlane.xlu0 %294 }
 0x442   :  { %876 = vrcp.f32 %v295_v3 }
 0x445   :  { %v298_v4 = vpop.xlane.xlu1 %297 }
 0x446   :  { %878 = vrcp.f32 %v298_v4 }
 0x449   :  { %v464_v9 = vpop.permute.xlu1 %463 }
 0x44a   :  { %v469_v11 = vsel %vm230_vm3, %v464_v9, 0 }
 0x44c   :  { %v877_v5 = vpop.eup %876 }
 0x44d   :  { %v301_v7 = vmul.f32 %v877_v5, %v873_v62  ;;  %v461_v12 = vpop.permute.xlu1 %460 }
 0x450   :  { %v879_v6 = vpop.eup %878 }
 0x451   :  { %v302_v8 = vmul.f32 %v879_v6, %v875_v0 }
 0x453   :  { %v303_v10 = vpack.c.bf16 %v302_v8, %v301_v7 }
 0x455   :  { %794 = vmatmul.mubr.msk.bf16.vlgmr.msra.gmra.mrb[8].mxu0 %vm280_vm5, %v303_v10 }
 0x456   :  { %810 = vmatpush3.bf16.xpose.msra.mxu0 %v469_v11  ;;  %811 = vmatprep.mubr.msk.bf16.mxu0 %vm913_vm0, %v912_v1 }
 0x457   :  { %815 = vmatprep.subr.bf16.mxu0 %v912_v1 }
 0x45d   :  { %812 = vmatmul.mubr.msk.bf16.vlgmr.msra.gmra.mrb[12].mxu0 %vm230_vm3, %v461_v12 }
 0x45e   :  { %817 = vmatprep.mubr.msk.bf16.mxu0 %vm913_vm0, %v912_v1 }
 0x528   :  { %v348_v14 = vpop.f32.mrb[8].mxu0 }
 0x529   :  { %v795_v15 = vpop.f32.mrb[9].mxu0  ;;  %v355_v28 = vpack.c.bf16 %v348_v14, %v348_v14 }
 0x52a   :  { %v351_v16 = vpop.f32.mrb[10].mxu0 }
 0x52b   :  { %v358_v18 = vpack.c.bf16 %v351_v16, %v351_v16  ;;  %v796_v19 = vpop.f32.mrb[11].mxu0 }
 0x52d   :  { %800 = vmatmul.mubr.msk.bf16.vlgmr.msra.gmra.mrb[8].mxu1 %vm230_vm3, %v358_v18 }
 0x52e   :  { %804 = vmatpush3.bf16.msra.mxu1 %v869_v17  ;;  %805 = vmatprep.mubr.msk.bf16.mxu1 %vm913_vm0, %v912_v1 }
 0x52f   :  { %821 = vmatprep.subr.bf16.mxu1 %v912_v1 }
 0x530   :  { %v505_v20 = vpop.f32.mrb[12].mxu0 }
 0x531   :  { %v512_v21 = vsel %vm229_vm4, %v505_v20, -1e+30  ;;  %v813_v22 = vpop.f32.mrb[13].mxu0 }
 0x532   :  { %v508_v23 = vpop.f32.mrb[14].mxu0  ;;  %v514_v24 = vsel %vm280_vm5, %v512_v21, -inf }
 0x533   :  { %v513_v25 = vsel %vm229_vm4, %v508_v23, -1e+30  ;;  %515 = vmax.xlane.f32.xlu1 %v514_v24  ;;  %v814_v26 = vpop.f32.mrb[15].mxu0 }
 0x534   :  { %v517_v27 = vsel %vm280_vm5, %v513_v25, -inf }
 0x535   :  { %518 = vmax.xlane.f32.xlu0 %v517_v27 }
 0x539   :  { %806 = vmatmul.mubr.msk.bf16.vlgmr.msra.gmra.mrb[8].mxu1 %vm230_vm3, %v355_v28 }
 0x53a   :  { %823 = vmatprep.mubr.msk.bf16.mxu1 %vm913_vm0, %v912_v1  ;;  %822 = vmatpush3.bf16.msra.mxu1 %v870_v39 }
 0x53b   :  { %827 = vmatprep.subr.bf16.mxu1 %v912_v1 }
 0x5c0   :  { %v516_v29 = vpop.xlane.xlu1 %515 }
 0x5c1   :  { %v520_v30 = vsub.f32 %v512_v21, %v516_v29 }
 0x5c2   :  { %v519_v31 = vpop.xlane.xlu0 %518 }
 0x5c3   :  { %v522_v32 = vmul.f32 1.442695, %v520_v30  ;;  %v521_v33 = vsub.f32 %v513_v25, %v519_v31 }
 0x5c5   :  { %880 = vpow2.f32 %v522_v32  ;;  %v524_v34 = vmul.f32 1.442695, %v521_v33 }
 0x5c7   :  { %882 = vpow2.f32 %v524_v34 }
 0x5cf   :  { %v881_v35 = vpop.eup %880 }
 0x5d0   :  { %v526_v36 = vsel %vm280_vm5, %v881_v35, 0.0 }
 0x5d1   :  { %v883_v37 = vpop.eup %882  ;;  %527 = vadd.xlane.f32.xlu0 %v526_v36 }
 0x5d2   :  { %v529_v38 = vsel %vm280_vm5, %v883_v37, 0.0 }
 0x5d5   :  { %530 = vadd.xlane.f32.xlu0 %v529_v38 }
 0x5eb   :  { %537 = vrot.lane.b32.xlu0 %v1035_v53, %s919_s27 }
 0x65e   :  { %v528_v40 = vpop.xlane.xlu0 %527 }
 0x65f   :  { %884 = vrcp.f32 %v528_v40 }
 0x662   :  { %v531_v41 = vpop.xlane.xlu0 %530 }
 0x663   :  { %886 = vrcp.f32 %v531_v41 }
 0x666   :  { %v538_v42 = vpop.permute.xlu0 %537 }
 0x667   :  { %v543_v43 = vsel %vm310_vm6, %v538_v42, 0 }
 0x668   :  { %816 = vmatpush3.bf16.msra.mxu0 %v543_v43 }
 0x669   :  { %v885_v44 = vpop.eup %884 }
 0x66a   :  { %v534_v46 = vmul.f32 %v885_v44, %v881_v35 }
 0x66d   :  { %v887_v45 = vpop.eup %886 }
 0x66e   :  { %v535_v47 = vmul.f32 %v887_v45, %v883_v37 }
 0x670   :  { %v536_v48 = vpack.c.bf16 %v535_v47, %v534_v46 }
 0x672   :  { %818 = vmatmul.mubr.msk.bf16.vlgmr.msra.gmra.mrb[16].mxu0 %vm280_vm5, %v536_v48 }
 0x745   :  { %v579_v49 = vpop.f32.mrb[16].mxu0 }
 0x746   :  { %v586_v51 = vpack.c.bf16 %v579_v49, %v579_v49  ;;  %v819_v52 = vpop.f32.mrb[17].mxu0 }
 0x747   :  { %v582_v53 = vpop.f32.mrb[18].mxu0 }
 0x748   :  { %v820_v54 = vpop.f32.mrb[19].mxu0  ;;  %824 = vmatmul.mubr.msk.bf16.vlgmr.msra.gmra.mrb[8].mxu1 %vm230_vm3, %v586_v51  ;;  %v639_v55 = vpack.c.bf16 %v582_v53, %v582_v53 }
 0x749   :  { %828 = vmatpush3.bf16.msra.mxu1 %v871_v50  ;;  %829 = vmatprep.mubr.msk.bf16.mxu1 %vm913_vm0, %v912_v1 }
 0x754   :  { %830 = vmatmul.mubr.msk.bf16.vlgmr.msra.gmra.mrb[8].mxu1 %vm230_vm3, %v639_v55 }
 0x827   :  { %v685_v56 = vpop.f32.mrb[8].mxu1 }
 0x828   :  { %692 = vst.msk [vmem:[#allocation2] sm:$0xff] %vm69_vm1, %v685_v56  ;;  %v831_v57 = vpop.f32.mrb[9].mxu1 }
 0x829   :  { %v688_v58 = vpop.f32.mrb[10].mxu1 }
 0x82a   :  { %899 = shalt.err (!%p896_p4)
}
 0x82b   :  { %s900_s13 = scalar_lea.hbm %s1108_s7, 128 }
 0x82c   :  { %p901_p5 = scmp.ne.s32.totalorder %s1108_s7, %s900_s13  ;;  %p904_p6 = scmp.lt.u32.totalorder %s900_s13, %s1108_s7 }
 0x82e   :  { %p906_p7 = pnand %p904_p6, %p901_p5 }
 0x830   :  { %909 = shalt.err (!%p906_p7)
}
 0x831   :  { %702 = dma.vmem_to_hbm [thread:$0]  %s700_s10, 128, %s1108_s7, [#allocation3]   ;;  %v832_v1 = vpop.f32.mrb[11].mxu1 }
 0x832   :  { %910 = dma.done.wait [#allocation3], 128  }
 0x833   :  { %911 = vsyncadd [#allocation3], 4294967168 }
 0x834   :  { %706 = vsyncpa [#allocation3], 1 }

</bundles_post_ra>
